<compile_context>
chip_gen: v7x
topology: tpu7x:2x2x1
jax: 0.10.0
libtpu: 0.0.40
codegen_flags: <defaults>
</compile_context>

<pallas_src>
import functools
import math

import jax
import jax.numpy as jnp
from jax.experimental import pallas as pl
from jax.experimental.pallas import tpu as pltpu


def _ceil_to(x, m):
    return ((x + m - 1) // m) * m


def _pick_tile(padded_dim, candidates):
    for c in candidates:
        if padded_dim % c == 0:
            return c
    return candidates[-1]


# ----------------------------------------------------------------------------
# Fused matmul kernel: out = (x @ w) * scale + shift, K-tiled with f32 scratch
# ----------------------------------------------------------------------------
def _mm_bn_kernel(x_ref, w_ref, s_ref, b_ref, o_ref, acc_ref):
    k = pl.program_id(2)

    @pl.when(k == 0)
    def _():
        acc_ref[...] = jnp.zeros_like(acc_ref)

    # bf16 operands -> MXU fast path; accumulate in f32.
    acc_ref[...] += jnp.dot(x_ref[...], w_ref[...],
                            preferred_element_type=jnp.float32)

    @pl.when(k == pl.num_programs(2) - 1)
    def _():
        y = acc_ref[...] * s_ref[...] + b_ref[...]   # f32 epilogue (BN affine)
        o_ref[...] = y.astype(o_ref.dtype)


def prepare_linear_bn(w, scale, shift):
    """One-time prep: pad to tile multiples, cast weight to bf16.

    w: (K, N) f32, scale/shift: (N,) f32 (per-output-channel affine).
    """
    K, N = w.shape
    Kp = _ceil_to(K, 128)
    Np = _ceil_to(N, 128)
    wp = jnp.pad(w.astype(jnp.float32),
                 ((0, Kp - K), (0, Np - N))).astype(jnp.bfloat16)
    sp = jnp.pad(scale.astype(jnp.float32).reshape(1, -1),
                 ((0, 0), (0, Np - N)))
    bp = jnp.pad(shift.astype(jnp.float32).reshape(1, -1),
                 ((0, 0), (0, Np - N)))
    return {'w': wp, 's': sp, 'b': bp}


def fused_linear_bn(x_pad, lin, out_dtype):
    """x_pad: (Mp, Kp) bf16, already padded to match lin['w'].shape[0]."""
    Mp, Kp = x_pad.shape
    Kp_w, Np = lin['w'].shape
    assert Kp == Kp_w, (Kp, Kp_w)
    assert Mp % 8 == 0

    TM = min(128, Mp)
    assert Mp % TM == 0
    TN = _pick_tile(Np, (256, 128))      # 256 feeds v6e/v7x 256x256 MXU
    TK = _pick_tile(Kp, (512, 256, 128))  # bound VMEM independent of K

    grid = (Mp // TM, Np // TN, Kp // TK)

    out = pl.pallas_call(
        _mm_bn_kernel,
        out_shape=jax.ShapeDtypeStruct((Mp, Np), out_dtype),
        grid=grid,
        in_specs=[
            pl.BlockSpec((TM, TK), lambda i, j, k: (i, k)),
            pl.BlockSpec((TK, TN), lambda i, j, k: (k, j)),
            pl.BlockSpec((1, TN), lambda i, j, k: (0, j)),
            pl.BlockSpec((1, TN), lambda i, j, k: (0, j)),
        ],
        out_specs=pl.BlockSpec((TM, TN), lambda i, j, k: (i, j)),
        scratch_shapes=[pltpu.VMEM((TM, TN), jnp.float32)],
        compiler_params=pltpu.CompilerParams(
            dimension_semantics=("parallel", "parallel", "arbitrary")),
    )(x_pad, lin['w'], lin['s'], lin['b'])
    return out


# ----------------------------------------------------------------------------
# ClassBlock forward
# ----------------------------------------------------------------------------
def classblock_forward(params, x, *, class_num):
    B, D = x.shape
    fc1, fc2 = params['fc1'], params['fc2']
    Kp1 = fc1['w'].shape[0]
    assert D <= Kp1

    # Adaptive M tile: don't pad a tiny batch up to 128 MXU rows.
    Mp = _ceil_to(B, 16)                 # 16 = bf16 sublane packing
    if Mp > 128:
        Mp = _ceil_to(B, 128)

    # Single pad + bf16 cast of the activations (halves DMA bytes).
    xp = jnp.zeros((Mp, Kp1), jnp.bfloat16).at[:B, :D].set(
        x.astype(jnp.bfloat16))

    # add_block: Linear(input_dim, 512) + BatchNorm1d(512) fused (bias folded
    # through the BN affine in init). Intermediate kept bf16 and already
    # lane/tile aligned for the second matmul (512 = multiple of 128).
    h = fused_linear_bn(xp, fc1, jnp.bfloat16)

    # Dropout(p=droprate): identity in eval mode.
    # TODO(synk): training-mode stochastic dropout not reproduced.

    # classifier: Linear(512, class_num) (scale = 1, shift = bias).
    out = fused_linear_bn(h, fc2, jnp.float32)
    return out[:B, :class_num]


# ----------------------------------------------------------------------------
# Deterministic parameter init matching the PyTorch initializers
# ----------------------------------------------------------------------------
def init_params(key, input_dim, class_num, num_bottleneck=512, eps=1e-5):
    k1, k2, k3 = jax.random.split(key, 3)

    # Linear(input_dim, num_bottleneck): kaiming_normal_(a=0, mode='fan_out')
    # -> std = sqrt(2 / num_bottleneck); bias = 0.
    w1 = jax.random.normal(k1, (input_dim, num_bottleneck), jnp.float32) \
        * math.sqrt(2.0 / num_bottleneck)
    b1 = jnp.zeros((num_bottleneck,), jnp.float32)

    # BatchNorm1d(num_bottleneck): weight ~ N(1, 0.02), bias = 0,
    # running_mean = 0, running_var = 1 (eval-mode fold).
    gamma = 1.0 + 0.02 * jax.random.normal(k2, (num_bottleneck,), jnp.float32)
    beta = jnp.zeros((num_bottleneck,), jnp.float32)
    scale1 = gamma / jnp.sqrt(1.0 + eps)
    shift1 = beta + b1 * scale1          # Linear bias folded through BN

    # classifier Linear(num_bottleneck, class_num): weight ~ N(0, 0.001), bias 0.
    w2 = jax.random.normal(k3, (num_bottleneck, class_num), jnp.float32) * 0.001
    b2 = jnp.zeros((class_num,), jnp.float32)

    return {
        'fc1': prepare_linear_bn(w1, scale1, shift1),
        'fc2': prepare_linear_bn(w2, jnp.ones((class_num,), jnp.float32), b2),
    }


# ----------------------------------------------------------------------------
if __name__ == "__main__":
    input_dim, class_num, batch = 1024, 10, 4
    key = jax.random.PRNGKey(0)
    pkey, xkey = jax.random.split(key)

    params = init_params(pkey, input_dim, class_num)
    x = jax.random.normal(xkey, (batch, input_dim), jnp.float32)

    fwd = jax.jit(functools.partial(classblock_forward, class_num=class_num))
    out = jax.block_until_ready(fwd(params, x))
    assert out.shape == (batch, class_num), out.shape
    assert bool(jnp.all(jnp.isfinite(out)))
    print("KERNEL_OK")
</pallas_src>

<mosaic_0001>
module attributes {stable_mosaic.version = 11 : i64} {
  func.func @_mm_bn_kernel(%arg0: i32, %arg1: i32, %arg2: i32, %arg3: memref<16x512xbf16, #tpu.memory_space<vmem>>, %arg4: memref<512x256xbf16, #tpu.memory_space<vmem>>, %arg5: memref<1x256xf32, #tpu.memory_space<vmem>>, %arg6: memref<1x256xf32, #tpu.memory_space<vmem>>, %arg7: memref<16x256xbf16, #tpu.memory_space<vmem>>, %arg8: memref<16x256xf32, #tpu.memory_space<vmem>>) attributes {dimension_semantics = [#tpu.dimension_semantics<parallel>, #tpu.dimension_semantics<parallel>, #tpu.dimension_semantics<arbitrary>], iteration_bounds = array<i64: 1, 2, 2>, scalar_prefetch = 0 : i64, scratch_operands = 1 : i64, tpu.core_type = #tpu.core_type<tc>, window_params = [{transform_indices = @transform_0, window_bounds = array<i64: 16, 512>}, {transform_indices = @transform_1, window_bounds = array<i64: 512, 256>}, {transform_indices = @transform_2, window_bounds = array<i64: 1, 256>}, {transform_indices = @transform_3, window_bounds = array<i64: 1, 256>}, {transform_indices = @transform_4, window_bounds = array<i64: 16, 256>}]} {
    %c0_i32 = arith.constant 0 : i32
    %0 = arith.cmpi eq, %arg2, %c0_i32 : i32
    %1 = arith.extui %0 : i1 to i32
    %c0_i32_0 = arith.constant 0 : i32
    %2 = arith.cmpi ne, %1, %c0_i32_0 : i32
    scf.if %2 {
      %cst_9 = arith.constant 0.000000e+00 : f32
      %12 = vector.broadcast %cst_9 : f32 to vector<16x256xf32>
      %c0_10 = arith.constant 0 : index
      %c0_11 = arith.constant 0 : index
      %13 = vector.load %arg8[%c0_10, %c0_11] : memref<16x256xf32, #tpu.memory_space<vmem>>, vector<16x256xf32>
      tpu.vector_store %arg8[%c0_10, %c0_11], %12 {strides = array<i32>} : memref<16x256xf32, #tpu.memory_space<vmem>>, vector<16x256xf32>,
    } else {
    }
    %c0 = arith.constant 0 : index
    %c0_1 = arith.constant 0 : index
    %3 = vector.load %arg8[%c0, %c0_1] : memref<16x256xf32, #tpu.memory_space<vmem>>, vector<16x256xf32>
    %c0_2 = arith.constant 0 : index
    %c0_3 = arith.constant 0 : index
    %4 = vector.load %arg3[%c0_2, %c0_3] : memref<16x512xbf16, #tpu.memory_space<vmem>>, vector<16x512xbf16>
    %c0_4 = arith.constant 0 : index
    %c0_5 = arith.constant 0 : index
    %5 = vector.load %arg4[%c0_4, %c0_5] : memref<512x256xbf16, #tpu.memory_space<vmem>>, vector<512x256xbf16>
    %cst = arith.constant dense<0.000000e+00> : vector<16x256xf32>
    %6 = tpu.matmul %4, %5, %cst {dimension_numbers = #tpu.dot_dimension_numbers<[1], [0], [0], [1], [0, 0, 1, 1], [], []>} : vector<16x512xbf16>, vector<512x256xbf16>, vector<16x256xf32> -> vector<16x256xf32>
    %7 = arith.addf %3, %6 : vector<16x256xf32>
    %c0_6 = arith.constant 0 : index
    %c0_7 = arith.constant 0 : index
    %8 = vector.load %arg8[%c0_6, %c0_7] : memref<16x256xf32, #tpu.memory_space<vmem>>, vector<16x256xf32>
    tpu.vector_store %arg8[%c0_6, %c0_7], %7 {strides = array<i32>} : memref<16x256xf32, #tpu.memory_space<vmem>>, vector<16x256xf32>,
    %c1_i32 = arith.constant 1 : i32
    %9 = arith.cmpi eq, %arg2, %c1_i32 : i32
    %10 = arith.extui %9 : i1 to i32
    %c0_i32_8 = arith.constant 0 : i32
    %11 = arith.cmpi ne, %10, %c0_i32_8 : i32
    scf.if %11 {
      %c0_9 = arith.constant 0 : index
      %c0_10 = arith.constant 0 : index
      %12 = vector.load %arg8[%c0_9, %c0_10] : memref<16x256xf32, #tpu.memory_space<vmem>>, vector<16x256xf32>
      %c0_11 = arith.constant 0 : index
      %c0_12 = arith.constant 0 : index
      %13 = vector.load %arg5[%c0_11, %c0_12] : memref<1x256xf32, #tpu.memory_space<vmem>>, vector<1x256xf32>
      %14 = vector.broadcast %13 : vector<1x256xf32> to vector<16x256xf32>
      %15 = arith.mulf %12, %14 : vector<16x256xf32>
      %c0_13 = arith.constant 0 : index
      %c0_14 = arith.constant 0 : index
      %16 = vector.load %arg6[%c0_13, %c0_14] : memref<1x256xf32, #tpu.memory_space<vmem>>, vector<1x256xf32>
      %17 = vector.broadcast %16 : vector<1x256xf32> to vector<16x256xf32>
      %18 = arith.addf %15, %17 : vector<16x256xf32>
      %19 = arith.truncf %18 : vector<16x256xf32> to vector<16x256xbf16>
      %c0_15 = arith.constant 0 : index
      %c0_16 = arith.constant 0 : index
      %20 = vector.load %arg7[%c0_15, %c0_16] : memref<16x256xbf16, #tpu.memory_space<vmem>>, vector<16x256xbf16>
      tpu.vector_store %arg7[%c0_15, %c0_16], %19 {strides = array<i32>} : memref<16x256xbf16, #tpu.memory_space<vmem>>, vector<16x256xbf16>,
    } else {
    }
    return
  }
  func.func @transform_0(%arg0: i32, %arg1: i32, %arg2: i32) -> (i32, i32) {
    %c0_i32 = arith.constant 0 : i32
    return %arg0, %arg2 : i32, i32
  }
  func.func @transform_1(%arg0: i32, %arg1: i32, %arg2: i32) -> (i32, i32) {
    %c0_i32 = arith.constant 0 : i32
    return %arg2, %arg1 : i32, i32
  }
  func.func @transform_2(%arg0: i32, %arg1: i32, %arg2: i32) -> (i32, i32) {
    %c0_i32 = arith.constant 0 : i32
    %c0_i32_0 = arith.constant 0 : i32
    return %c0_i32, %arg1 : i32, i32
  }
  func.func @transform_3(%arg0: i32, %arg1: i32, %arg2: i32) -> (i32, i32) {
    %c0_i32 = arith.constant 0 : i32
    %c0_i32_0 = arith.constant 0 : i32
    return %c0_i32, %arg1 : i32, i32
  }
  func.func @transform_4(%arg0: i32, %arg1: i32, %arg2: i32) -> (i32, i32) {
    %c0_i32 = arith.constant 0 : i32
    return %arg0, %arg1 : i32, i32
  }
}

module attributes {stable_mosaic.version = 11 : i64} {
  func.func @_mm_bn_kernel(%arg0: i32, %arg1: i32, %arg2: i32, %arg3: memref<16x512xbf16, #tpu.memory_space<vmem>>, %arg4: memref<512x128xbf16, #tpu.memory_space<vmem>>, %arg5: memref<1x128xf32, #tpu.memory_space<vmem>>, %arg6: memref<1x128xf32, #tpu.memory_space<vmem>>, %arg7: memref<16x128xf32, #tpu.memory_space<vmem>>, %arg8: memref<16x128xf32, #tpu.memory_space<vmem>>) attributes {dimension_semantics = [#tpu.dimension_semantics<parallel>, #tpu.dimension_semantics<parallel>, #tpu.dimension_semantics<arbitrary>], iteration_bounds = array<i64: 1, 1, 1>, scalar_prefetch = 0 : i64, scratch_operands = 1 : i64, tpu.core_type = #tpu.core_type<tc>, window_params = [{transform_indices = @transform_0, window_bounds = array<i64: 16, 512>}, {transform_indices = @transform_1, window_bounds = array<i64: 512, 128>}, {transform_indices = @transform_2, window_bounds = array<i64: 1, 128>}, {transform_indices = @transform_3, window_bounds = array<i64: 1, 128>}, {transform_indices = @transform_4, window_bounds = array<i64: 16, 128>}]} {
    %c0_i32 = arith.constant 0 : i32
    %0 = arith.cmpi eq, %arg2, %c0_i32 : i32
    %1 = arith.extui %0 : i1 to i32
    %c0_i32_0 = arith.constant 0 : i32
    %2 = arith.cmpi ne, %1, %c0_i32_0 : i32
    scf.if %2 {
      %cst_10 = arith.constant 0.000000e+00 : f32
      %12 = vector.broadcast %cst_10 : f32 to vector<16x128xf32>
      %c0_11 = arith.constant 0 : index
      %c0_12 = arith.constant 0 : index
      %13 = vector.load %arg8[%c0_11, %c0_12] : memref<16x128xf32, #tpu.memory_space<vmem>>, vector<16x128xf32>
      tpu.vector_store %arg8[%c0_11, %c0_12], %12 {strides = array<i32>} : memref<16x128xf32, #tpu.memory_space<vmem>>, vector<16x128xf32>,
    } else {
    }
    %c0 = arith.constant 0 : index
    %c0_1 = arith.constant 0 : index
    %3 = vector.load %arg8[%c0, %c0_1] : memref<16x128xf32, #tpu.memory_space<vmem>>, vector<16x128xf32>
    %c0_2 = arith.constant 0 : index
    %c0_3 = arith.constant 0 : index
    %4 = vector.load %arg3[%c0_2, %c0_3] : memref<16x512xbf16, #tpu.memory_space<vmem>>, vector<16x512xbf16>
    %c0_4 = arith.constant 0 : index
    %c0_5 = arith.constant 0 : index
    %5 = vector.load %arg4[%c0_4, %c0_5] : memref<512x128xbf16, #tpu.memory_space<vmem>>, vector<512x128xbf16>
    %cst = arith.constant dense<0.000000e+00> : vector<16x128xf32>
    %6 = tpu.matmul %4, %5, %cst {dimension_numbers = #tpu.dot_dimension_numbers<[1], [0], [0], [1], [0, 0, 1, 1], [], []>} : vector<16x512xbf16>, vector<512x128xbf16>, vector<16x128xf32> -> vector<16x128xf32>
    %7 = arith.addf %3, %6 : vector<16x128xf32>
    %c0_6 = arith.constant 0 : index
    %c0_7 = arith.constant 0 : index
    %8 = vector.load %arg8[%c0_6, %c0_7] : memref<16x128xf32, #tpu.memory_space<vmem>>, vector<16x128xf32>
    tpu.vector_store %arg8[%c0_6, %c0_7], %7 {strides = array<i32>} : memref<16x128xf32, #tpu.memory_space<vmem>>, vector<16x128xf32>,
    %c0_i32_8 = arith.constant 0 : i32
    %9 = arith.cmpi eq, %arg2, %c0_i32_8 : i32
    %10 = arith.extui %9 : i1 to i32
    %c0_i32_9 = arith.constant 0 : i32
    %11 = arith.cmpi ne, %10, %c0_i32_9 : i32
    scf.if %11 {
      %c0_10 = arith.constant 0 : index
      %c0_11 = arith.constant 0 : index
      %12 = vector.load %arg8[%c0_10, %c0_11] : memref<16x128xf32, #tpu.memory_space<vmem>>, vector<16x128xf32>
      %c0_12 = arith.constant 0 : index
      %c0_13 = arith.constant 0 : index
      %13 = vector.load %arg5[%c0_12, %c0_13] : memref<1x128xf32, #tpu.memory_space<vmem>>, vector<1x128xf32>
      %14 = vector.broadcast %13 : vector<1x128xf32> to vector<16x128xf32>
      %15 = arith.mulf %12, %14 : vector<16x128xf32>
      %c0_14 = arith.constant 0 : index
      %c0_15 = arith.constant 0 : index
      %16 = vector.load %arg6[%c0_14, %c0_15] : memref<1x128xf32, #tpu.memory_space<vmem>>, vector<1x128xf32>
      %17 = vector.broadcast %16 : vector<1x128xf32> to vector<16x128xf32>
      %18 = arith.addf %15, %17 : vector<16x128xf32>
      %c0_16 = arith.constant 0 : index
      %c0_17 = arith.constant 0 : index
      %19 = vector.load %arg7[%c0_16, %c0_17] : memref<16x128xf32, #tpu.memory_space<vmem>>, vector<16x128xf32>
      tpu.vector_store %arg7[%c0_16, %c0_17], %18 {strides = array<i32>} : memref<16x128xf32, #tpu.memory_space<vmem>>, vector<16x128xf32>,
    } else {
    }
    return
  }
  func.func @transform_0(%arg0: i32, %arg1: i32, %arg2: i32) -> (i32, i32) {
    %c0_i32 = arith.constant 0 : i32
    return %arg0, %arg2 : i32, i32
  }
  func.func @transform_1(%arg0: i32, %arg1: i32, %arg2: i32) -> (i32, i32) {
    %c0_i32 = arith.constant 0 : i32
    return %arg2, %arg1 : i32, i32
  }
  func.func @transform_2(%arg0: i32, %arg1: i32, %arg2: i32) -> (i32, i32) {
    %c0_i32 = arith.constant 0 : i32
    %c0_i32_0 = arith.constant 0 : i32
    return %c0_i32, %arg1 : i32, i32
  }
  func.func @transform_3(%arg0: i32, %arg1: i32, %arg2: i32) -> (i32, i32) {
    %c0_i32 = arith.constant 0 : i32
    %c0_i32_0 = arith.constant 0 : i32
    return %c0_i32, %arg1 : i32, i32
  }
  func.func @transform_4(%arg0: i32, %arg1: i32, %arg2: i32) -> (i32, i32) {
    %c0_i32 = arith.constant 0 : i32
    return %arg0, %arg1 : i32, i32
  }
}

</mosaic_0001>

<bundles_post_ra>
// kernel: classblock_forward.2
= control target key start
LH: loop header
LB: loop body
LE: loop exit
PB: predicated region body
PF: predicated region fallthrough
CT: control target
= control target key end

     0   :  { %s1844_s0 = inlined_call_operand.vmem [shape: bf16[16,1024], index: 0, kind: input, shape index: {}]   ;;  %s1845_s1 = inlined_call_operand.hbm [shape: bf16[1024,512], index: 1, kind: input, shape index: {}]   ;;  %s1846_s2 = inlined_call_operand.vmem [shape: f32[1,512], index: 2, kind: input, shape index: {}]   ;;  %s1847_s3 = inlined_call_operand.vmem [shape: f32[1,512], index: 3, kind: input, shape index: {}]   ;;  %s1848_s4 = inlined_call_operand.vmem [shape: bf16[16,512], index: 4, kind: output, shape index: {}]  }
   0x1   :  { %1853 = sst [smem:[#allocation13_spill]] %s1844_s0 }
   0x2   :  { %9 = vsyncpa [#allocation5], 0 }
   0x3   :  { %11 = vsyncpa [#allocation5 + $0x1], 0  ;;  %s1537_s15 = smov 0   ;;  %s1539_s16 = smov 0  }
   0x4   :  { %s1541_s17 = smov 0   ;;  %s1543_s18 = smov 0  }
   0x5   :  { %s1545_s19 = smov 0   ;;  %s1547_s20 = smov 0  }
   0x6   :  { %s1549_s21 = smov 0   ;;  %s1551_s22 = smov 0  }
   0x7   :  { %s1553_s23 = smov 0   ;;  %s1555_s24 = smov 0  }
   0x8   :  { %s1557_s25 = smov 0   ;;  %s1559_s26 = smov 0  }
   0x9 LB: > { %1854 = sst [smem:[#allocation8_spill]] %s1485_s21  ;;  %s1071_s27 = sadd.s32 4294967295, %s1505_s26   ;;  %s1505_s26 = sphi %s1559_s26, %s17_s26   ;;  %s1501_s25 = sphi %s1557_s25, %s1869_s25   ;;  %s1497_s24 = sphi %s1555_s24, %s1876_s24   ;;  %s1493_s23 = sphi %s1553_s23, %s1867_s23   ;;  %s1489_s22 = sphi %s1551_s22, %s1875_s22   ;;  %s1485_s21 = sphi %s1549_s21, %s1866_s21   ;;  %s1481_s20 = sphi %s1547_s20, %s1865_s20   ;;  %s1477_s19 = sphi %s1545_s19, %s1874_s19   ;;  %s1473_s18 = sphi %s1543_s18, %s1873_s18   ;;  %s1469_s17 = sphi %s1541_s17, %s1872_s17   ;;  %s1465_s16 = sphi %s1539_s16, %s1871_s16   ;;  %s1461_s15 = sphi %s1537_s15, %s1870_s15  }
   0xa   : > { %1855 = sst [smem:[#allocation9_spill]] %s1501_s25  ;;  %s29_s28 = sadd.s32 1, %s1497_s24 }
   0xb   : > { %p30_p0 = scmp.ge.s32.totalorder %s29_s28, 2  ;;  %s32_s29 = sadd.s32 1, %s1501_s25 }
   0xc   : > { %s45_s30 = sadd.s32 1, %s1485_s21  ;;  %p52_p1 = scmp.ne.s32.totalorder %s1485_s21, %s1481_s20 }
   0xd   : > { %s1878_s28 = smov (%p30_p0, %s29_s28), 0  ;;  %s1880_s29 = smov (!%p30_p0, %s32_s29), %s1501_s25 }
   0xe   : > { %1856 = sst [smem:[#allocation10_spill]] %s1878_s28  ;;  %s41_s5 = ssub.s32 %s1497_s24, %s1878_s28 }
   0xf   : > { %p53_p2 = scmp.eq.s32.totalorder %s1505_s26, 0  ;;  %p34_p3 = scmp.ge.s32.totalorder %s1880_s29, 2 }
  0x10   : > { %p43_p4 = scmp.eq.s32.totalorder %s41_s5, 0  ;;  %s73_s7 = sadd.s32 1, %s1477_s19 }
  0x11   : > { %p1609_p5 = por %p53_p2, %p52_p1  ;;  %s1882_s29 = smov (%p34_p3, %s1880_s29), 0 }
  0x12   : > { %1858 = sst [smem:[#allocation11_spill]] %s1882_s29  ;;  %s69_s9 = ssub.s32 %s1501_s25, %s1882_s29 }
  0x13   : > { %s1617_s8 = scalar_select %p43_p4, %s1485_s21, %s45_s30  }
  0x14   : > { %p80_p6 = scmp.ne.s32.totalorder %s1477_s19, %s1473_s18  ;;  %s70_s10 = sor.u32 %s69_s9, %s41_s5 }
  0x15   : > { %1859 = sst [smem:[#allocation12_spill]] %s1617_s8  ;;  %p86_p7 = scmp.ne.s32.totalorder %s1473_s18, %s1469_s17 }
  0x16   : > { %p71_p8 = scmp.eq.s32.totalorder %s70_s10, 0  ;;  %p1625_p9 = por %p80_p6, %p53_p2 }
  0x17   : > { %p87_p10 = scmp.eq.s32.totalorder %s1071_s27, 0  ;;  %p151_p11 = scmp.eq.s32.totalorder %s69_s9, 0 }
  0x18   : > { %s1632_s12 = scalar_select %p71_p8, %s1477_s19, %s73_s7  }
  0x19   : > { %p1634_p12 = por %p87_p10, %p86_p7  ;;  %s153_s14 = sadd.s32 1, %s1465_s16 }
  0x1a   : > { %s1640_s30 = scalar_select %p151_p11, %s1465_s16, %s153_s14  }
  0x1b   : > { %p163_p13 = scmp.ne.s32.totalorder %s1465_s16, %s1461_s15  ;;  %p164_p0 = scmp.eq.s32.totalorder %s1071_s27, 3 }
  0x1c   : > { %p1074_p2 = scmp.ge.s32.totalorder %s1505_s26, 4 }
  0x1d   : > { %p1646_p1 = por %p164_p0, %p163_p13 }
  0x1e   : > { %186 = sbr.rel (%p1074_p2) target bundleno = 78 (0x4e), region = 16 }
  0x1f   : > { %s1862_s17 = scalar_select %p1646_p1, 1, 0 }
  0x25   : > { %189 = sbr.rel (!%p1609_p5) target bundleno = 49 (0x31), region = 20  ;;  %s191_s5 = sand.u32 (%p1609_p5), 1, %s1485_s21  }
  0x26   : > { %s1166_s7 = sshll.u32 (%p1609_p5), %s1497_s24, 4  ;;  %s1075_s9 = sshll.u32 (%p1609_p5), %s191_s5, 5 }
  0x27   : > { %s1863_s0 = sld [smem:[#allocation13_spill]] (%p1609_p5)  ;;  %s193_s27 = scalar_lea.vmem (%p1609_p5), [#allocation3], %s1075_s9 }
  0x2d   : > { %s199_s29 = scalar_lea.vmem %s1863_s0, %s1166_s7 }
  0x2e   : > { %v212_v0 = vld [vmem:[%s199_s29] sm:$0xff]  ;;  %v214_v1 = vld [vmem:[%s199_s29 + $0x8] sm:$0xff] }
  0x2f   : > { %v216_v2 = vld [vmem:[%s199_s29 + $0x20] sm:$0xff]  ;;  %213 = vst [vmem:[%s193_s27] sm:$0xff] %v212_v0  ;;  %215 = vst [vmem:[%s193_s27 + $0x8] sm:$0xff] %v214_v1  ;;  %v218_v3 = vld [vmem:[%s199_s29 + $0x28] sm:$0xff] }
  0x30   : > { %217 = vst [vmem:[%s193_s27 + $0x10] sm:$0xff] %v216_v2  ;;  %219 = vst [vmem:[%s193_s27 + $0x18] sm:$0xff] %v218_v3 }
  0x31 PF: > { %s226_s6 = sand.u32 1, %s1477_s19   ;;  %s1080_s5 = sshll.u32 %s1501_s25, 1 }
  0x32   : > { %s1078_s28 = sshll.u32 %s226_s6, 9  ;;  %s1167_s8 = sshll.u32 %s1497_s24, 8 }
  0x33   : > { %s237_s10 = sadd.s32 %s1167_s8, %s1080_s5  ;;  %s230_s7 = scalar_lea.vmem [#allocation4], %s1078_s28 }
  0x34   : > { %s240_s14 = sshll.u32 %s230_s7, 4  ;;  %s1082_s0 = sshll.u32 %s237_s10, 6  ;;  %s1661_s14 = int_to_ptr.vmem [resolvable:$true] %s240_s14 }
  0x35   : > { %s1666_s29 = scalar_lea.hbm %s1845_s1, %s1082_s0  ;;  %s1668_s27 = scalar_lea.sflag [#allocation5], %s226_s6 }
  0x36   : > { %s1379_s25 = scalar_lea.hbm %s1666_s29, 8192  ;;  %s1383_s5 = scalar_lea.hbm %s1845_s1, 32768 }
  0x37   : > { %p1380_p3 = scmp.ne.s32.totalorder %s1666_s29, %s1379_s25  ;;  %p1384_p6 = scmp.lt.u32.totalorder %s1666_s29, %s1845_s1 }
  0x38   : > { %p1385_p7 = scmp.lt.u32.totalorder %s1383_s5, %s1379_s25  ;;  %p1387_p10 = scmp.lt.u32.totalorder %s1379_s25, %s1666_s29 }
  0x39   : > { %p1381_p4 = pnand %p1380_p3, %p1625_p9 }
  0x3a   : > { %p1386_p8 = por %p1385_p7, %p1384_p6 }
  0x3b   : > { %p1382_p5 = pneg %p1381_p4 }
  0x3c   : > { %p1388_p11 = por %p1387_p10, %p1386_p8 }
  0x3e   : > { %p1389_p13 = pnand %p1388_p11, %p1382_p5 }
  0x40   : > { %1392 = shalt.err (!%p1389_p13)
}
  0x41   : > { %s1393_s0 = scalar_lea.vmem %s1661_s14, 8192  ;;  %s1507_s21 = smov [#allocation4]  }
  0x42   : > { %p1394_p0 = scmp.ne.s32.totalorder %s1661_s14, %s1393_s0  ;;  %s1397_s6 = sshll.u32 %s1507_s21, 4  ;;  %s1398_s6 = int_to_ptr.vmem [resolvable:$false] %s1397_s6 }
  0x43   : > { %s1399_s9 = scalar_lea.vmem %s1398_s6, 16384  ;;  %p1400_p4 = scmp.lt.s32.totalorder %s1661_s14, %s1398_s6 }
  0x44   : > { %p1395_p2 = pnand %p1394_p0, %p1625_p9  ;;  %p1401_p1 = scmp.lt.s32.totalorder %s1399_s9, %s1393_s0 }
  0x46   : > { %p1396_p3 = pneg %p1395_p2  ;;  %p1402_p6 = por %p1401_p1, %p1400_p4 }
  0x48   : > { %p1403_p7 = pnand %p1402_p6, %p1396_p3 }
  0x4a   : > { %1406 = shalt.err (!%p1403_p7)
}
  0x4b   : > { %s1508_s25 = smov 256   ;;  %s1509_s28 = smov 128  }
  0x4c   : > { %s1510_s8 = smov 8  }
  0x4d   : > { %1175 = dma.hbm_to_vmem [thread:$0]  (%p1625_p9), %s1666_s29, 8192, %s1661_s14, %s1668_s27, %s1508_s25, %s1509_s28, %s1510_s8  }
  0x4e PF: > { %p1083_p5 = scmp.ge.s32.totalorder %s1505_s26, 1  ;;  %p264_p8 = scmp.lt.s32.totalorder %s1505_s26, 5 }
  0x50   : > { %p265_p10 = pnand %p1083_p5, %p264_p8 }
  0x51   : > { %s271_s5 = sand.u32 (!%p265_p10), 1, %s1481_s20   ;;  %s277_s10 = sand.u32 (!%p265_p10), 1, %s1473_s18  }
  0x52   : > { %268 = sbr.rel (%p265_p10) target bundleno = 411 (0x19b), region = 55  ;;  %s1084_s7 = sshll.u32 (!%p265_p10), %s271_s5, 5 }
  0x53   : > { %s1085_s0 = sshll.u32 (!%p265_p10), %s277_s10, 9  ;;  %s1696_s21 = scalar_lea.vmem (!%p265_p10), [#allocation3], %s1084_s7 }
  0x54   : > { %s278_s6 = scalar_lea.sflag (!%p265_p10), [#allocation5], %s277_s10  ;;  %s1698_s9 = scalar_lea.vmem (!%p265_p10), [#allocation4], %s1085_s0 }
  0x59   : > { %1456 = dma.done.wait (%p1634_p12), %s278_s6, 8192  }
  0x5a   : > { %1458 = vsyncadd (%p1634_p12), %s278_s6, 4294959104  ;;  %s314_s11 = sand.u32 1, %s1461_s15   ;;  %s1087_s14 = sshll.u32 %s1493_s23, 1 }
  0x5b   : > { %s1086_s29 = sshll.u32 %s314_s11, 4  ;;  %p322_p9 = scmp.lt.s32.totalorder %s1087_s14, 3 }
  0x5c   : > { %s1716_s13 = scalar_lea.vmem [#allocation6], %s1086_s29  ;;  %p1089_p12 = scmp.ne.s32.totalorder %s1489_s22, 0 }
  0x5d   : > { %s1884_s14 = smov (!%p322_p9, %s1087_s14), 3  ;;  %v1511_v4 = vmov (!%p1089_p12), 0.0  }
  0x5e   : > { %s324_s25 = scalar_lea.vmem %s1846_s2, %s1884_s14  ;;  %s329_s5 = scalar_lea.vmem %s1847_s3, %s1884_s14  ;;  %337 = vst [vmem:[#allocation2] sm:$0xff] (!%p1089_p12), %v1511_v4  ;;  %338 = vst [vmem:[#allocation2 + $0x8] sm:$0xff] (!%p1089_p12), %v1511_v4 }
  0x5f   : > { %336 = sbr.rel (%p1089_p12) target bundleno = 102 (0x66), region = 67  ;;  %339 = vst [vmem:[#allocation2 + $0x10] sm:$0xff] (!%p1089_p12), %v1511_v4  ;;  %340 = vst [vmem:[#allocation2 + $0x18] sm:$0xff] (!%p1089_p12), %v1511_v4 }
  0x66 PF: > { %v1277_v5 = vld [vmem:[%s1698_s9 + $0x4] ss:$8 sps:$4 sm:$0xff]   ;;  %v1281_v7 = vld [vmem:[%s1698_s9] ss:$8 sps:$4 sm:$0xff]   ;;  %v1283_v9 = vld [vmem:[%s1698_s9 + $0x14] ss:$8 sps:$4 sm:$0xff]  }
  0x67   : > { %v1279_v6 = vld [vmem:[%s1698_s9 + $0x104] ss:$8 sps:$4 sm:$0xff]   ;;  %753 = vmatprep.subr.bf16.mxu1 %v1277_v5  ;;  %v1282_v8 = vld [vmem:[%s1698_s9 + $0x100] ss:$8 sps:$4 sm:$0xff]   ;;  %v1285_v10 = vld [vmem:[%s1698_s9 + $0x114] ss:$8 sps:$4 sm:$0xff]  }
  0x68   : > { %796 = vmatprep.subr.bf16.mxu0 %v1279_v6  ;;  %754 = vmatpush1.bf16.msra.mxu1 %v1281_v7  ;;  %v1287_v11 = vld [vmem:[%s1698_s9 + $0x10] ss:$8 sps:$4 sm:$0xff]   ;;  %v1289_v13 = vld [vmem:[%s1698_s9 + $0x24] ss:$8 sps:$4 sm:$0xff]   ;;  %v1293_v15 = vld [vmem:[%s1698_s9 + $0x20] ss:$8 sps:$4 sm:$0xff]  }
  0x69   : > { %797 = vmatpush1.bf16.msra.mxu0 %v1282_v8  ;;  %755 = vmatprep.subr.bf16.mxu1 %v1283_v9  ;;  %v1288_v12 = vld [vmem:[%s1698_s9 + $0x110] ss:$8 sps:$4 sm:$0xff]   ;;  %v1291_v14 = vld [vmem:[%s1698_s9 + $0x124] ss:$8 sps:$4 sm:$0xff]   ;;  %v1294_v16 = vld [vmem:[%s1698_s9 + $0x120] ss:$8 sps:$4 sm:$0xff]  }
  0x6a   : > { %798 = vmatprep.subr.bf16.mxu0 %v1285_v10  ;;  %v1295_v17 = vld [vmem:[%s1698_s9 + $0x34] ss:$8 sps:$4 sm:$0xff]   ;;  %v1299_v19 = vld [vmem:[%s1698_s9 + $0x30] ss:$8 sps:$4 sm:$0xff]   ;;  %v1301_v21 = vld [vmem:[%s1698_s9 + $0x44] ss:$8 sps:$4 sm:$0xff]  }
  0x6b   : > { %v1297_v18 = vld [vmem:[%s1698_s9 + $0x134] ss:$8 sps:$4 sm:$0xff]   ;;  %v1300_v20 = vld [vmem:[%s1698_s9 + $0x130] ss:$8 sps:$4 sm:$0xff]   ;;  %v1303_v22 = vld [vmem:[%s1698_s9 + $0x144] ss:$8 sps:$4 sm:$0xff]  }
  0x6c   : > { %756 = vmatpush1.bf16.msra.mxu1 %v1287_v11  ;;  %v1305_v23 = vld [vmem:[%s1698_s9 + $0x40] ss:$8 sps:$4 sm:$0xff]   ;;  %v1307_v25 = vld [vmem:[%s1698_s9 + $0x54] ss:$8 sps:$4 sm:$0xff]   ;;  %v1311_v27 = vld [vmem:[%s1698_s9 + $0x50] ss:$8 sps:$4 sm:$0xff]  }
  0x6d   : > { %799 = vmatpush1.bf16.msra.mxu0 %v1288_v12  ;;  %757 = vmatprep.subr.bf16.mxu1 %v1289_v13  ;;  %v1306_v24 = vld [vmem:[%s1698_s9 + $0x140] ss:$8 sps:$4 sm:$0xff]   ;;  %v1309_v26 = vld [vmem:[%s1698_s9 + $0x154] ss:$8 sps:$4 sm:$0xff]   ;;  %v1312_v28 = vld [vmem:[%s1698_s9 + $0x150] ss:$8 sps:$4 sm:$0xff]  }
  0x6e   : > { %800 = vmatprep.subr.bf16.mxu0 %v1291_v14  ;;  %v1313_v29 = vld [vmem:[%s1698_s9 + $0x64] ss:$8 sps:$4 sm:$0xff]   ;;  %v1317_v31 = vld [vmem:[%s1698_s9 + $0x60] ss:$8 sps:$4 sm:$0xff]   ;;  %v1319_v33 = vld [vmem:[%s1698_s9 + $0x74] ss:$8 sps:$4 sm:$0xff]  }
  0x6f   : > { %v1315_v30 = vld [vmem:[%s1698_s9 + $0x164] ss:$8 sps:$4 sm:$0xff]   ;;  %v1318_v32 = vld [vmem:[%s1698_s9 + $0x160] ss:$8 sps:$4 sm:$0xff]   ;;  %v1321_v34 = vld [vmem:[%s1698_s9 + $0x174] ss:$8 sps:$4 sm:$0xff]  }
  0x70   : > { %758 = vmatpush1.bf16.msra.mxu1 %v1293_v15  ;;  %v1323_v35 = vld [vmem:[%s1698_s9 + $0x70] ss:$8 sps:$4 sm:$0xff]   ;;  %v1325_v37 = vld [vmem:[%s1698_s9 + $0x84] ss:$8 sps:$4 sm:$0xff]   ;;  %v1329_v39 = vld [vmem:[%s1698_s9 + $0x80] ss:$8 sps:$4 sm:$0xff]  }
  0x71   : > { %801 = vmatpush1.bf16.msra.mxu0 %v1294_v16  ;;  %759 = vmatprep.subr.bf16.mxu1 %v1295_v17  ;;  %v1324_v36 = vld [vmem:[%s1698_s9 + $0x170] ss:$8 sps:$4 sm:$0xff]   ;;  %v1327_v38 = vld [vmem:[%s1698_s9 + $0x184] ss:$8 sps:$4 sm:$0xff]   ;;  %v1330_v40 = vld [vmem:[%s1698_s9 + $0x180] ss:$8 sps:$4 sm:$0xff]  }
  0x72   : > { %802 = vmatprep.subr.bf16.mxu0 %v1297_v18  ;;  %v1331_v41 = vld [vmem:[%s1698_s9 + $0x94] ss:$8 sps:$4 sm:$0xff]   ;;  %v1335_v43 = vld [vmem:[%s1698_s9 + $0x90] ss:$8 sps:$4 sm:$0xff]   ;;  %v1337_v45 = vld [vmem:[%s1698_s9 + $0xa4] ss:$8 sps:$4 sm:$0xff]  }
  0x73   : > { %v1333_v42 = vld [vmem:[%s1698_s9 + $0x194] ss:$8 sps:$4 sm:$0xff]   ;;  %v1336_v44 = vld [vmem:[%s1698_s9 + $0x190] ss:$8 sps:$4 sm:$0xff]   ;;  %v1339_v46 = vld [vmem:[%s1698_s9 + $0x1a4] ss:$8 sps:$4 sm:$0xff]  }
  0x74   : > { %760 = vmatpush1.bf16.msra.mxu1 %v1299_v19  ;;  %v1341_v47 = vld [vmem:[%s1698_s9 + $0xa0] ss:$8 sps:$4 sm:$0xff]   ;;  %v1343_v49 = vld [vmem:[%s1698_s9 + $0xb4] ss:$8 sps:$4 sm:$0xff]   ;;  %v1347_v51 = vld [vmem:[%s1698_s9 + $0xb0] ss:$8 sps:$4 sm:$0xff]  }
  0x75   : > { %803 = vmatpush1.bf16.msra.mxu0 %v1300_v20  ;;  %761 = vmatprep.subr.bf16.mxu1 %v1301_v21  ;;  %v1342_v48 = vld [vmem:[%s1698_s9 + $0x1a0] ss:$8 sps:$4 sm:$0xff]   ;;  %v1345_v50 = vld [vmem:[%s1698_s9 + $0x1b4] ss:$8 sps:$4 sm:$0xff]   ;;  %v1348_v53 = vld [vmem:[%s1698_s9 + $0x1b0] ss:$8 sps:$4 sm:$0xff]  }
  0x76   : > { %804 = vmatprep.subr.bf16.mxu0 %v1303_v22  ;;  %v1375_v52 = vld [vmem:[%s1696_s21 + $0x4] ss:$16 sps:$4 sm:$0xff]   ;;  %v1378_v56 = vld [vmem:[%s1696_s21 + $0xc] ss:$16 sps:$4 sm:$0xff]   ;;  %v1353_v57 = vld [vmem:[%s1698_s9 + $0xc0] ss:$8 sps:$4 sm:$0xff]  }
  0x77   : > { %v1349_v54 = vld [vmem:[%s1698_s9 + $0xc4] ss:$8 sps:$4 sm:$0xff]   ;;  %785 = vmatprep.mubr.bf16.mxu1 %v1375_v52  ;;  %828 = vmatprep.mubr.bf16.mxu0 %v1378_v56  ;;  %v1354_v58 = vld [vmem:[%s1698_s9 + $0x1c0] ss:$8 sps:$4 sm:$0xff]   ;;  %v1355_v59 = vld [vmem:[%s1698_s9 + $0xd4] ss:$8 sps:$4 sm:$0xff]  }
  0x78   : > { %762 = vmatpush1.bf16.msra.mxu1 %v1305_v23  ;;  %v1351_v55 = vld [vmem:[%s1698_s9 + $0x1c4] ss:$8 sps:$4 sm:$0xff]   ;;  %v1357_v60 = vld [vmem:[%s1698_s9 + $0x1d4] ss:$8 sps:$4 sm:$0xff]   ;;  %v1359_v61 = vld [vmem:[%s1698_s9 + $0xd0] ss:$8 sps:$4 sm:$0xff]  }
  0x79   : > { %805 = vmatpush1.bf16.msra.mxu0 %v1306_v24  ;;  %763 = vmatprep.subr.bf16.mxu1 %v1307_v25  ;;  %v1360_v62 = vld [vmem:[%s1698_s9 + $0x1d0] ss:$8 sps:$4 sm:$0xff]   ;;  %v1361_v63 = vld [vmem:[%s1698_s9 + $0xe4] ss:$8 sps:$4 sm:$0xff]   ;;  %v1365_v1 = vld [vmem:[%s1698_s9 + $0xe0] ss:$8 sps:$4 sm:$0xff]  }
  0x7a   : > { %806 = vmatprep.subr.bf16.mxu0 %v1309_v26  ;;  %v1363_v0 = vld [vmem:[%s1698_s9 + $0x1e4] ss:$8 sps:$4 sm:$0xff]   ;;  %v1366_v2 = vld [vmem:[%s1698_s9 + $0x1e0] ss:$8 sps:$4 sm:$0xff]   ;;  %v1367_v3 = vld [vmem:[%s1698_s9 + $0xf4] ss:$8 sps:$4 sm:$0xff]  }
  0x7b   : > { %v1369_v4 = vld [vmem:[%s1698_s9 + $0x1f4] ss:$8 sps:$4 sm:$0xff]   ;;  %v1371_v5 = vld [vmem:[%s1698_s9 + $0xf0] ss:$8 sps:$4 sm:$0xff]   ;;  %v341_v10 = vld [vmem:[#allocation2] sm:$0xff]  ;;  %p1158_p1 = scmp.ne.s32.totalorder %s1489_s22, 1 }
  0x7c   : > { %764 = vmatpush1.bf16.msra.mxu1 %v1311_v27  ;;  %v1372_v6 = vld [vmem:[%s1698_s9 + $0x1f0] ss:$8 sps:$4 sm:$0xff]   ;;  %v342_v14 = vld [vmem:[#allocation2 + $0x8] sm:$0xff] }
  0x7d   : > { %807 = vmatpush1.bf16.msra.mxu0 %v1312_v28  ;;  %765 = vmatprep.subr.bf16.mxu1 %v1313_v29  ;;  %v1373_v7 = vld [vmem:[%s1696_s21] ss:$16 sps:$4 sm:$0xff]   ;;  %v1376_v8 = vld [vmem:[%s1696_s21 + $0x8] ss:$16 sps:$4 sm:$0xff]   ;;  %v857_v29 = vlaneseq (!%p1158_p1) }
  0x7e   : > { %808 = vmatprep.subr.bf16.mxu0 %v1315_v30  ;;  %v343_v18 = vld [vmem:[#allocation2 + $0x10] sm:$0xff]  ;;  %v344_v23 = vld [vmem:[#allocation2 + $0x18] sm:$0xff] }
  0x7f   : > { %v858_v30 = vshrl.u32 (!%p1158_p1), %v857_v29, 7 }
  0x80   : > { %766 = vmatpush1.bf16.msra.mxu1 %v1317_v31  ;;  %v855_v31 = vld [vmem:[%s324_s25] sm:$0x3] (!%p1158_p1) }
  0x81   : > { %809 = vmatpush1.bf16.msra.mxu0 %v1318_v32  ;;  %767 = vmatprep.subr.bf16.mxu1 %v1319_v33  ;;  %v871_v32 = vld [vmem:[%s329_s5] sm:$0x3] (!%p1158_p1) }
  0x82   : > { %810 = vmatprep.subr.bf16.mxu0 %v1321_v34  ;;  %v859_v34 = vsub.s32 (!%p1158_p1), 0, %v858_v30 }
  0x84   : > { %768 = vmatpush1.bf16.msra.mxu1 %v1323_v35  ;;  %v863_v35 = vsub.s32 (!%p1158_p1), 1, %v858_v30 }
  0x85   : > { %811 = vmatpush1.bf16.msra.mxu0 %v1324_v36  ;;  %769 = vmatprep.subr.bf16.mxu1 %v1325_v37 }
  0x86   : > { %812 = vmatprep.subr.bf16.mxu0 %v1327_v38 }
  0x88   : > { %770 = vmatpush1.bf16.msra.mxu1 %v1329_v39  ;;  %v860_v39 = vrot.slane (!%p1158_p1), %v855_v31, %v859_v34 }
  0x89   : > { %813 = vmatpush1.bf16.msra.mxu0 %v1330_v40  ;;  %771 = vmatprep.subr.bf16.mxu1 %v1331_v41  ;;  %v864_v40 = vrot.slane (!%p1158_p1), %v855_v31, %v863_v35  ;;  %v876_v41 = vrot.slane (!%p1158_p1), %v871_v32, %v859_v34 }
  0x8a   : > { %814 = vmatprep.subr.bf16.mxu0 %v1333_v42  ;;  %v880_v42 = vrot.slane (!%p1158_p1), %v871_v32, %v863_v35 }
  0x8c   : > { %772 = vmatpush1.bf16.msra.mxu1 %v1335_v43 }
  0x8d   : > { %815 = vmatpush1.bf16.msra.mxu0 %v1336_v44  ;;  %773 = vmatprep.subr.bf16.mxu1 %v1337_v45 }
  0x8e   : > { %816 = vmatprep.subr.bf16.mxu0 %v1339_v46 }
  0x90   : > { %774 = vmatpush1.bf16.msra.mxu1 %v1341_v47 }
  0x91   : > { %817 = vmatpush1.bf16.msra.mxu0 %v1342_v48  ;;  %775 = vmatprep.subr.bf16.mxu1 %v1343_v49 }
  0x92   : > { %818 = vmatprep.subr.bf16.mxu0 %v1345_v50 }
  0x94   : > { %776 = vmatpush1.bf16.msra.mxu1 %v1347_v51 }
  0x95   : > { %819 = vmatpush1.bf16.msra.mxu0 %v1348_v53  ;;  %777 = vmatprep.subr.bf16.mxu1 %v1349_v54 }
  0x96   : > { %820 = vmatprep.subr.bf16.mxu0 %v1351_v55 }
  0x98   : > { %778 = vmatpush1.bf16.msra.mxu1 %v1353_v57 }
  0x99   : > { %821 = vmatpush1.bf16.msra.mxu0 %v1354_v58  ;;  %779 = vmatprep.subr.bf16.mxu1 %v1355_v59 }
  0x9a   : > { %822 = vmatprep.subr.bf16.mxu0 %v1357_v60 }
  0x9c   : > { %780 = vmatpush1.bf16.msra.mxu1 %v1359_v61 }
  0x9d   : > { %823 = vmatpush1.bf16.msra.mxu0 %v1360_v62  ;;  %781 = vmatprep.subr.bf16.mxu1 %v1361_v63 }
  0x9e   : > { %824 = vmatprep.subr.bf16.mxu0 %v1363_v0 }
  0xa0   : > { %782 = vmatpush1.bf16.msra.mxu1 %v1365_v1 }
  0xa1   : > { %825 = vmatpush1.bf16.msra.mxu0 %v1366_v2  ;;  %783 = vmatprep.subr.bf16.mxu1 %v1367_v3 }
  0xa2   : > { %826 = vmatprep.subr.bf16.mxu0 %v1369_v4 }
  0xa4   : > { %784 = vmatpush1.bf16.msra.mxu1 %v1371_v5 }
  0xa5   : > { %827 = vmatpush1.bf16.msra.mxu0 %v1372_v6 }
  0xa7   : > { %786 = vmatmul.mubr.bf16.vlgmr.msra.gmra.mrb[0].mxu1 %v1373_v7 }
  0xa8   : > { %829 = vmatmul.mubr.bf16.vlgmr.msra.gmra.mrb[0].mxu0 %v1376_v8 }
 0x17a   : > { %v787_v9 = vpop.f32.mrb[0].mxu1 }
 0x17b   : > { %v830_v11 = vpop.f32.mrb[0].mxu0  ;;  %v789_v13 = vpop.f32.mrb[1].mxu1 }
 0x17c   : > { %v831_v12 = vadd.f32 %v830_v11, %v787_v9  ;;  %v832_v15 = vpop.f32.mrb[1].mxu0  ;;  %v791_v17 = vpop.f32.mrb[2].mxu1 }
 0x17d   : > { %v833_v16 = vadd.f32 %v832_v15, %v789_v13  ;;  %v834_v19 = vpop.f32.mrb[2].mxu0  ;;  %v793_v22 = vpop.f32.mrb[3].mxu1  ;;  %850 = sbr.rel (%p1158_p1) target bundleno = 402 (0x192), region = 71 }
 0x17e   : > { %v839_v20 = vadd.f32 %v831_v12, %v341_v10  ;;  %v835_v21 = vadd.f32 %v834_v19, %v791_v17  ;;  %v836_v24 = vpop.f32.mrb[3].mxu0 }
 0x17f   : > { %v840_v25 = vadd.f32 %v833_v16, %v342_v14  ;;  %v837_v26 = vadd.f32 %v836_v24, %v793_v22 }
 0x180   : > { %843 = vst [vmem:[#allocation2] sm:$0xff] %v839_v20  ;;  %v841_v27 = vadd.f32 %v835_v21, %v343_v18 }
 0x181   : > { %844 = vst [vmem:[#allocation2 + $0x8] sm:$0xff] %v840_v25  ;;  %v842_v28 = vadd.f32 %v837_v26, %v344_v23 }
 0x182   : > { %845 = vst [vmem:[#allocation2 + $0x10] sm:$0xff] %v841_v27 }
 0x183   : > { %846 = vst [vmem:[#allocation2 + $0x18] sm:$0xff] %v842_v28 }
 0x187   : > { %v851_v33 = vld [vmem:[#allocation2] sm:$0xff] }
 0x188   : > { %v852_v36 = vld [vmem:[#allocation2 + $0x8] sm:$0xff]  ;;  %v867_v43 = vmul.f32 %v860_v39, %v851_v33 }
 0x189   : > { %v853_v37 = vld [vmem:[#allocation2 + $0x10] sm:$0xff]  ;;  %v868_v44 = vmul.f32 %v864_v40, %v852_v36 }
 0x18a   : > { %v854_v38 = vld [vmem:[#allocation2 + $0x18] sm:$0xff]  ;;  %v869_v45 = vmul.f32 %v860_v39, %v853_v37  ;;  %v883_v47 = vadd.f32 %v876_v41, %v867_v43 }
 0x18b   : > { %v870_v46 = vmul.f32 %v864_v40, %v854_v38  ;;  %v884_v48 = vadd.f32 %v880_v42, %v868_v44 }
 0x18c   : > { %v885_v49 = vadd.f32 %v876_v41, %v869_v45 }
 0x18d   : > { %v886_v50 = vadd.f32 %v880_v42, %v870_v46  ;;  %v1168_v51 = vpack.c.bf16 %v884_v48, %v883_v47 }
 0x18f   : > { %v1169_v52 = vpack.c.bf16 %v886_v50, %v885_v49  ;;  %899 = vst [vmem:[%s1716_s13] sm:$0xff] %v1168_v51 }
 0x191   : > { %900 = vst [vmem:[%s1716_s13 + $0x8] sm:$0xff] %v1169_v52 }
 0x192 PF: > { %p1864_p11 = scmp.ne.s32.totalorder %s1862_s17, 0 }
 0x193   : > { %s1170_s22 = sshll.u32 (%p1864_p11), %s1493_s23, 3 }
 0x194   : > { %907 = sbr.rel (!%p1864_p11) target bundleno = 411 (0x19b), region = 75  ;;  %s913_s9 = scalar_lea.vmem (%p1864_p11), %s1848_s4, %s1170_s22 }
 0x196   : > { %v943_v53 = vld [vmem:[%s1716_s13] sm:$0xff] (%p1864_p11) }
 0x197   : > { %944 = vst [vmem:[%s913_s9] sm:$0xff] (%p1864_p11), %v943_v53 }
 0x198   : > { %v945_v54 = vld [vmem:[%s1716_s13 + $0x8] sm:$0xff] (%p1864_p11) }
 0x199   : > { %946 = vst [vmem:[%s913_s9 + $0x10] sm:$0xff] (%p1864_p11), %v945_v54 }
 0x19b PF: > { %s17_s26 = sadd.s32 1, %s1505_s26   ;;  %s1865_s20 = sld [smem:[#allocation8_spill]] }
 0x19c   : > { %p14_p13 = scmp.ge.s32.totalorder %s17_s26, 6   ;;  %s1866_s21 = sld [smem:[#allocation12_spill]] }
 0x19d   : > { %s1867_s23 = sld [smem:[#allocation9_spill]]  ;;  %s1868_s11 = sld [smem:[#allocation10_spill]] }
 0x19e   : > { %s1869_s25 = sld [smem:[#allocation11_spill]]  ;;  %s1870_s15 = smov %s1465_s16 }
 0x19f   : > { %s1871_s16 = smov %s1640_s30  ;;  %s1872_s17 = smov %s1473_s18 }
 0x1a0   : > { %s1873_s18 = smov %s1477_s19  ;;  %s1874_s19 = smov %s1632_s12 }
 0x1a1   : > { %s1875_s22 = smov %s1497_s24  ;;  %16 = sbr.rel (!%p14_p13) target bundleno = 9 (0x9), region = 159 }
 0x1a3   : > { %s1876_s24 = smov %s1868_s11 }
 0x1a8   :  { %962 = vsyncpa [#allocation5], 1 }
 0x1a9   :  { %964 = vsyncpa [#allocation5 + $0x1], 1 }

// kernel: classblock_forward.3
= control target key start
LH: loop header
LB: loop body
LE: loop exit
PB: predicated region body
PF: predicated region fallthrough
CT: control target
= control target key end

     0   :  { %s686_s1 = inlined_call_operand.vmem [shape: bf16[512,128], index: 1, kind: input, shape index: {}]   ;;  %s687_s0 = inlined_call_operand.vmem [shape: bf16[16,512], index: 0, kind: input, shape index: {}]   ;;  %s688_s2 = inlined_call_operand.vmem [shape: f32[1,128], index: 2, kind: input, shape index: {}]   ;;  %s689_s3 = inlined_call_operand.vmem [shape: f32[1,128], index: 3, kind: input, shape index: {}]   ;;  %s690_s4 = inlined_call_operand.vmem [shape: f32[16,128], index: 4, kind: output, shape index: {}]  }
   0x1   :  { %v503_v0 = vld [vmem:[%s686_s1 + $0x40] sm:$0xff]   ;;  %v507_v4 = vld [vmem:[%s686_s1 + $0x48] sm:$0xff]   ;;  %v511_v8 = vld [vmem:[%s686_s1 + $0x50] sm:$0xff]  }
   0x2   :  { %v504_v1 = vld [vmem:[%s686_s1 + $0xc0] sm:$0xff]   ;;  %459 = vmatprep.subr.bf16.mxu0 %v503_v0  ;;  %v508_v5 = vld [vmem:[%s686_s1 + $0xc8] sm:$0xff]   ;;  %v512_v9 = vld [vmem:[%s686_s1 + $0xd0] sm:$0xff]  }
   0x3   :  { %v505_v2 = vld [vmem:[%s686_s1] sm:$0xff]   ;;  %481 = vmatprep.subr.bf16.mxu1 %v504_v1  ;;  %v509_v6 = vld [vmem:[%s686_s1 + $0x8] sm:$0xff]   ;;  %v513_v10 = vld [vmem:[%s686_s1 + $0x10] sm:$0xff]  }
   0x4   :  { %v506_v3 = vld [vmem:[%s686_s1 + $0x80] sm:$0xff]   ;;  %460 = vmatpush3.bf16.msra.mxu0 %v505_v2  ;;  %v510_v7 = vld [vmem:[%s686_s1 + $0x88] sm:$0xff]   ;;  %v514_v11 = vld [vmem:[%s686_s1 + $0x90] sm:$0xff]  }
   0x5   :  { %482 = vmatpush3.bf16.msra.mxu1 %v506_v3  ;;  %461 = vmatprep.subr.bf16.mxu0 %v507_v4  ;;  %v515_v12 = vld [vmem:[%s686_s1 + $0x58] sm:$0xff]   ;;  %v519_v16 = vld [vmem:[%s686_s1 + $0x60] sm:$0xff]   ;;  %v523_v20 = vld [vmem:[%s686_s1 + $0x68] sm:$0xff]  }
   0x6   :  { %483 = vmatprep.subr.bf16.mxu1 %v508_v5  ;;  %v516_v13 = vld [vmem:[%s686_s1 + $0xd8] sm:$0xff]   ;;  %v520_v17 = vld [vmem:[%s686_s1 + $0xe0] sm:$0xff]   ;;  %v524_v21 = vld [vmem:[%s686_s1 + $0xe8] sm:$0xff]  }
   0x7   :  { %v517_v14 = vld [vmem:[%s686_s1 + $0x18] sm:$0xff]   ;;  %v521_v18 = vld [vmem:[%s686_s1 + $0x20] sm:$0xff]   ;;  %v525_v22 = vld [vmem:[%s686_s1 + $0x28] sm:$0xff]  }
   0x8   :  { %462 = vmatpush3.bf16.msra.mxu0 %v509_v6  ;;  %v518_v15 = vld [vmem:[%s686_s1 + $0x98] sm:$0xff]   ;;  %v522_v19 = vld [vmem:[%s686_s1 + $0xa0] sm:$0xff]   ;;  %v526_v23 = vld [vmem:[%s686_s1 + $0xa8] sm:$0xff]  }
   0x9   :  { %484 = vmatpush3.bf16.msra.mxu1 %v510_v7  ;;  %463 = vmatprep.subr.bf16.mxu0 %v511_v8  ;;  %v527_v24 = vld [vmem:[%s686_s1 + $0x70] sm:$0xff]   ;;  %v531_v28 = vld [vmem:[%s686_s1 + $0x78] sm:$0xff]   ;;  %v457_v45 = vld [vmem:[%s688_s2] ss:$0 sm:$0xff] }
   0xa   :  { %485 = vmatprep.subr.bf16.mxu1 %v512_v9  ;;  %v528_v25 = vld [vmem:[%s686_s1 + $0xf0] sm:$0xff]   ;;  %v532_v29 = vld [vmem:[%s686_s1 + $0xf8] sm:$0xff]   ;;  %v458_v50 = vld [vmem:[%s689_s3] ss:$0 sm:$0xff] }
   0xb   :  { %v529_v26 = vld [vmem:[%s686_s1 + $0x30] sm:$0xff]   ;;  %v533_v30 = vld [vmem:[%s686_s1 + $0x38] sm:$0xff]  }
   0xc   :  { %464 = vmatpush3.bf16.msra.mxu0 %v513_v10  ;;  %v530_v27 = vld [vmem:[%s686_s1 + $0xb0] sm:$0xff]   ;;  %v534_v31 = vld [vmem:[%s686_s1 + $0xb8] sm:$0xff]  }
   0xd   :  { %486 = vmatpush3.bf16.msra.mxu1 %v514_v11  ;;  %465 = vmatprep.subr.bf16.mxu0 %v515_v12  ;;  %v535_v32 = vld [vmem:[%s687_s0] ss:$16 sps:$4 sm:$0xff]   ;;  %v537_v33 = vld [vmem:[%s687_s0 + $0x4] ss:$16 sps:$4 sm:$0xff]   ;;  %v538_v34 = vld [vmem:[%s687_s0 + $0x8] ss:$16 sps:$4 sm:$0xff]  }
   0xe   :  { %487 = vmatprep.subr.bf16.mxu1 %v516_v13  ;;  %v540_v35 = vld [vmem:[%s687_s0 + $0xc] ss:$16 sps:$4 sm:$0xff]   ;;  %338 = vmatprep.mubr.bf16.mxu0 %v537_v33 }
   0xf   :  { %379 = vmatprep.mubr.bf16.mxu1 %v540_v35 }
  0x10   :  { %466 = vmatpush3.bf16.msra.mxu0 %v517_v14 }
  0x11   :  { %488 = vmatpush3.bf16.msra.mxu1 %v518_v15  ;;  %467 = vmatprep.subr.bf16.mxu0 %v519_v16 }
  0x12   :  { %489 = vmatprep.subr.bf16.mxu1 %v520_v17 }
  0x14   :  { %468 = vmatpush3.bf16.msra.mxu0 %v521_v18 }
  0x15   :  { %490 = vmatpush3.bf16.msra.mxu1 %v522_v19  ;;  %469 = vmatprep.subr.bf16.mxu0 %v523_v20 }
  0x16   :  { %491 = vmatprep.subr.bf16.mxu1 %v524_v21 }
  0x18   :  { %470 = vmatpush3.bf16.msra.mxu0 %v525_v22 }
  0x19   :  { %492 = vmatpush3.bf16.msra.mxu1 %v526_v23  ;;  %471 = vmatprep.subr.bf16.mxu0 %v527_v24 }
  0x1a   :  { %493 = vmatprep.subr.bf16.mxu1 %v528_v25 }
  0x1c   :  { %472 = vmatpush3.bf16.msra.mxu0 %v529_v26 }
  0x1d   :  { %494 = vmatpush3.bf16.msra.mxu1 %v530_v27  ;;  %473 = vmatprep.subr.bf16.mxu0 %v531_v28 }
  0x1e   :  { %495 = vmatprep.subr.bf16.mxu1 %v532_v29 }
  0x20   :  { %474 = vmatpush3.bf16.msra.mxu0 %v533_v30 }
  0x21   :  { %496 = vmatpush3.bf16.msra.mxu1 %v534_v31 }
  0x23   :  { %339 = vmatmul.mubr.bf16.vlgmr.msra.gmra.mrb[0].mxu0 %v535_v32 }
  0x24   :  { %380 = vmatmul.mubr.bf16.vlgmr.msra.gmra.mrb[0].mxu1 %v538_v34 }
  0xf6   :  { %v475_v36 = vpop.f32.mrb[0].mxu0 }
  0xf7   :  { %v497_v37 = vpop.f32.mrb[0].mxu1  ;;  %v476_v38 = vpop.f32.mrb[1].mxu0 }
  0xf8   :  { %v477_v39 = vadd.f32 %v476_v38, %v475_v36  ;;  %v498_v40 = vpop.f32.mrb[1].mxu1  ;;  %v478_v41 = vpop.f32.mrb[2].mxu0 }
  0xf9   :  { %v499_v42 = vadd.f32 %v498_v40, %v497_v37  ;;  %v500_v43 = vpop.f32.mrb[2].mxu1  ;;  %v479_v44 = vpop.f32.mrb[3].mxu0 }
  0xfa   :  { %v480_v46 = vadd.f32 %v479_v44, %v478_v41  ;;  %v501_v47 = vpop.f32.mrb[3].mxu1 }
  0xfb   :  { %v382_v48 = vadd.f32 %v499_v42, %v477_v39  ;;  %v502_v49 = vadd.f32 %v501_v47, %v500_v43 }
  0xfd   :  { %v404_v51 = vmul.f32 %v457_v45, %v382_v48  ;;  %v385_v52 = vadd.f32 %v502_v49, %v480_v46 }
  0xff   :  { %v413_v53 = vadd.f32 %v458_v50, %v404_v51  ;;  %v405_v54 = vmul.f32 %v457_v45, %v385_v52 }
 0x101   :  { %415 = vst [vmem:[%s690_s4] sm:$0xff] %v413_v53  ;;  %v414_v55 = vadd.f32 %v458_v50, %v405_v54 }
 0x103   :  { %416 = vst [vmem:[%s690_s4 + $0x8] sm:$0xff] %v414_v55 }

</bundles_post_ra>
